<compile_context>
chip_gen: v5e
topology: v5e:2x2
jax: 0.10.0
libtpu: 0.0.40
codegen_flags: <defaults>
</compile_context>

<pallas_src>
import jax
import jax.numpy as jnp
from jax.experimental import pallas as pl
from jax.experimental.pallas import tpu as pltpu

_LANE = 128
_DEFAULT_BLOCK_BYTES = 4 << 20    # 4 MiB per block buffer; in+out double-buffered
                                  # = 16 MiB resident -> safe on every generation.
_MIN_PALLAS_ELEMS = 64 * 1024     # below this, plain fused XLA add is strictly faster.


def _double_kernel(x_ref, o_ref):
    # combined = tensor + tensor  (single load; HBM-bound, VPU has huge slack)
    v = x_ref[...]
    o_ref[...] = v + v


def _resolve_shape(total, shape):
    """Resolve -1 in `shape` and validate (matches torch.reshape semantics)."""
    shape = list(shape)
    neg = [i for i, s in enumerate(shape) if s == -1]
    if len(neg) > 1:
        raise ValueError(f"only one dimension may be -1, got {tuple(shape)}")
    if neg:
        idx = neg[0]
        known = 1
        for i, s in enumerate(shape):
            if i != idx:
                known *= s
        if known == 0 or total % known != 0:
            raise ValueError(
                f"cannot reshape array of size {total} into shape {tuple(shape)}")
        shape[idx] = total // known
    prod = 1
    for s in shape:
        prod *= s
    if prod != total:
        raise ValueError(
            f"cannot reshape array of size {total} into shape {tuple(shape)}")
    return tuple(shape)


def _sublane_multiple(dtype):
    """Rows granule so packed (sub-32-bit) dtypes tile cleanly: 8 f32, 16 bf16, 32 int8."""
    itemsize = jnp.dtype(dtype).itemsize
    return 8 * max(1, 4 // itemsize)


def simple_reshape_model(x, shape, *, block_bytes=_DEFAULT_BLOCK_BYTES,
                         force_pallas=False):
    """x: jnp array (any shape); shape: target reshape shape (may contain -1)."""
    total = x.size
    out_shape = _resolve_shape(total, shape)

    if total == 0:
        return (x + x).reshape(out_shape)

    # Tiny inputs: kernel-launch / per-step overhead dwarfs one vreg-scale add.
    if not force_pallas and total < _MIN_PALLAS_ELEMS:
        return (x + x).reshape(out_shape)

    itemsize = jnp.dtype(x.dtype).itemsize
    sub_mult = _sublane_multiple(x.dtype)

    flat = x.reshape(-1)
    aligned = (total // _LANE) * _LANE            # 128-aligned prefix handled by Pallas
    if aligned == 0:
        # Everything is a sub-128-element "tail" -> nothing worth a kernel launch.
        return (flat + flat).reshape(out_shape)

    rows = aligned // _LANE
    x2d = flat[:aligned].reshape(rows, _LANE)     # no padding; last block may be partial

    # Block rows from a constant byte budget (dtype-independent block size).
    br_budget = max(sub_mult, (block_bytes // (_LANE * itemsize) // sub_mult) * sub_mult)
    if rows < sub_mult:
        br = rows                                  # block == full extent (allowed)
    else:
        br = min(br_budget, (rows // sub_mult) * sub_mult)
        # Ensure >= 2 grid steps for medium+ inputs so v7x can use both TensorCores.
        if pl.cdiv(rows, br) < 2 and rows >= 2 * sub_mult:
            br = max(sub_mult,
                     ((pl.cdiv(rows, 2) + sub_mult - 1) // sub_mult) * sub_mult)
    grid = (pl.cdiv(rows, br),)

    block_buf_bytes = br * _LANE * itemsize
    # in + out, double-buffered, plus headroom; past v5e's 16 MiB scoped default.
    vmem_limit = int(min(56 << 20, max(32 << 20, 4 * block_buf_bytes + (8 << 20))))

    cost = pl.CostEstimate(
        flops=int(aligned),
        transcendentals=0,
        bytes_accessed=int(2 * aligned * itemsize),   # read N + write N
    )

    doubled = pl.pallas_call(
        _double_kernel,
        out_shape=jax.ShapeDtypeStruct((rows, _LANE), x.dtype),
        grid_spec=pltpu.PrefetchScalarGridSpec(
            num_scalar_prefetch=0,
            grid=grid,
            in_specs=[pl.BlockSpec((br, _LANE), lambda i: (i, 0))],
            out_specs=pl.BlockSpec((br, _LANE), lambda i: (i, 0)),
        ),
        compiler_params=pltpu.CompilerParams(
            dimension_semantics=("parallel",),   # independent tiles -> both TCs on v7x
            vmem_limit_bytes=vmem_limit,
        ),
        cost_estimate=cost,
    )(x2d)

    out_flat = doubled.reshape(-1)
    if aligned != total:
        tail = flat[aligned:]                     # < 128 elements: plain XLA add
        out_flat = jnp.concatenate([out_flat, tail + tail])
    return out_flat.reshape(out_shape)


if __name__ == "__main__":
    key = jax.random.PRNGKey(0)
    k1, k2 = jax.random.split(key)

    run = jax.jit(simple_reshape_model,
                  static_argnames=("shape", "block_bytes", "force_pallas"))

    # Case 1: shape from the original test — (2, 4, 16, 16) -> (2, -1).
    # 2048 elements, 128-aligned: pure Pallas path, grid split into 2 blocks.
    x1 = jax.random.normal(k1, (2, 4, 16, 16), dtype=jnp.float32)
    out1 = jax.block_until_ready(run(x1, shape=(2, -1), force_pallas=True))
    ref1 = (x1 + x1).reshape(2, -1)
    assert out1.shape == ref1.shape, (out1.shape, ref1.shape)
    assert jnp.allclose(out1, ref1), "mismatch vs reference (case 1)"

    # Case 2: size not a multiple of 128 (3*5*100 = 1500) — exercises the
    # aligned-prefix Pallas path (1408 elems, partial last block) + XLA tail (92).
    x2 = jax.random.normal(k2, (3, 5, 100), dtype=jnp.float32)
    out2 = jax.block_until_ready(run(x2, shape=(-1,), force_pallas=True))
    ref2 = (x2 + x2).reshape(-1)
    assert out2.shape == ref2.shape, (out2.shape, ref2.shape)
    assert jnp.allclose(out2, ref2), "mismatch vs reference (case 2)"

    print("KERNEL_OK")
</pallas_src>

<mosaic_0001>
module attributes {stable_mosaic.version = 11 : i64} {
  func.func @_double_kernel(%arg0: i32, %arg1: memref<8x128xf32, #tpu.memory_space<vmem>>, %arg2: memref<8x128xf32, #tpu.memory_space<vmem>>) attributes {dimension_semantics = [#tpu.dimension_semantics<parallel>], iteration_bounds = array<i64: 2>, scalar_prefetch = 0 : i64, scratch_operands = 0 : i64, tpu.core_type = #tpu.core_type<tc>, window_params = [{transform_indices = @transform_0, window_bounds = array<i64: 8, 128>}, {transform_indices = @transform_1, window_bounds = array<i64: 8, 128>}]} {
    %c0 = arith.constant 0 : index
    %c0_0 = arith.constant 0 : index
    %0 = vector.load %arg1[%c0, %c0_0] : memref<8x128xf32, #tpu.memory_space<vmem>>, vector<8x128xf32>
    %1 = arith.addf %0, %0 : vector<8x128xf32>
    %c0_1 = arith.constant 0 : index
    %c0_2 = arith.constant 0 : index
    %2 = vector.load %arg2[%c0_1, %c0_2] : memref<8x128xf32, #tpu.memory_space<vmem>>, vector<8x128xf32>
    tpu.vector_store %arg2[%c0_1, %c0_2], %1 {strides = array<i32>} : memref<8x128xf32, #tpu.memory_space<vmem>>, vector<8x128xf32>,
    return
  }
  func.func @transform_0(%arg0: i32) -> (i32, i32) {
    %c0_i32 = arith.constant 0 : i32
    %c0_i32_0 = arith.constant 0 : i32
    return %arg0, %c0_i32 : i32, i32
  }
  func.func @transform_1(%arg0: i32) -> (i32, i32) {
    %c0_i32 = arith.constant 0 : i32
    %c0_i32_0 = arith.constant 0 : i32
    return %arg0, %c0_i32 : i32, i32
  }
}

</mosaic_0001>

<bundles_post_ra>
// kernel: simple_reshape_model.1
= control target key start
LH: loop header
LB: loop body
LE: loop exit
PB: predicated region body
PF: predicated region fallthrough
CT: control target
= control target key end

     0   :  { %s189_s6 = smov 0   ;;  %s209_s0 = inlined_call_operand.vmem [shape: f32[16,128], index: 0, kind: input, shape index: {}]   ;;  %s210_s1 = inlined_call_operand.vmem [shape: f32[16,128], index: 1, kind: output, shape index: {}]  }
   0x1 LB: > { %s168_s7 = sadd.s32 4294967295, %s191_s6   ;;  %p172_p0 = scmp.ge.s32.totalorder %s191_s6, 1  ;;  %s191_s6 = sphi %s189_s6, %s11_s6  }
   0x2   : > { %p86_p1 = scmp.lt.s32.totalorder %s191_s6, 3 }
   0x4   : > { %p87_p2 = pnand %p172_p0, %p86_p1 }
   0x5   : > { %p104_p3 = scmp.lt.s32.totalorder (!%p87_p2), %s168_s7, 1 }
   0x6   : > { %90 = sbr.rel (%p87_p2) target bundleno = 18 (0x12), region = 24 }
   0xb   : > { %s212_s7 = smov (!%p104_p3, %s168_s7), 1 }
   0xc   : > { %s173_s8 = sshll.u32 %s212_s7, 3 }
   0xd   : > { %s107_s11 = scalar_lea.vmem %s209_s0, %s173_s8  ;;  %s111_s14 = scalar_lea.vmem %s210_s1, %s173_s8 }
   0xe   : > { %v112_v0 = vld [vmem:[%s107_s11] sm:$0xff] }
   0xf   : > { %v113_v1 = vadd.f32 %v112_v0, %v112_v0 }
  0x11   : > { %114 = vst [vmem:[%s111_s14] sm:$0xff] %v113_v1 }
  0x12 PF: > { %s11_s6 = sadd.s32 1, %s191_s6  }
  0x13   : > { %p8_p4 = scmp.ge.s32.totalorder %s11_s6, 4  }
  0x15   :  { %10 = sbr.rel (!%p8_p4) target bundleno = 1 (0x1), region = 54 }

</bundles_post_ra>
